<compile_context>
chip_gen: v7x
topology: tpu7x:2x2x1
jax: 0.10.0
libtpu: 0.0.40
codegen_flags: <defaults>
</compile_context>

<pallas_src>
import functools

import jax
import jax.numpy as jnp
from jax.experimental import pallas as pl
from jax.experimental.pallas import tpu as pltpu


def conv_gelu_kernel(x1_ref, x2_ref, m_ref, b_ref, o_ref, *,
                     H, WCout, C1, C2, KH, padding):
    """One batch element per grid step.

    x1_ref: (1, C1, H, W)            first input, native NCHW channel tiles
    x2_ref: (1, C2, H, W)            second input
    m_ref : (C1+C2, KH, W, W*Cout)   banded per-(cin,kh) weight matrices
    b_ref : (1, W*Cout)              bias tiled across W (lane-dense row)
    o_ref : (1, H, W*Cout)           lane-dense output: o[h, w*Cout + c]
    """
    f32 = jnp.float32
    Cin = C1 + C2

    # Per-kh partial sums S[kh][r, w*Cout+c] = sum_{kw,cin} x[r, w+kw-p] * Wt
    S = [jnp.zeros((H, WCout), dtype=f32) for _ in range(KH)]
    for cin in range(Cin):
        if cin < C1:
            Xc = x1_ref[0, cin].astype(f32)          # (H, W) channel tile
        else:
            Xc = x2_ref[0, cin - C1].astype(f32)
        for kh in range(KH):
            S[kh] = S[kh] + jnp.dot(Xc, m_ref[cin, kh],
                                    preferred_element_type=f32)

    # Combine kh taps: out[h] = sum_kh S[kh][h + kh - padding]  (zero outside).
    acc = b_ref[...].astype(f32) + S[padding]
    for kh in range(KH):
        sh = kh - padding
        if sh == 0:
            continue
        if sh > 0:
            shifted = jnp.concatenate(
                [S[kh][sh:, :], jnp.zeros((sh, WCout), dtype=f32)], axis=0)
        else:
            shifted = jnp.concatenate(
                [jnp.zeros((-sh, WCout), dtype=f32), S[kh][:sh, :]], axis=0)
        acc = acc + shifted

    # Exact (erf-based) GELU -- matches torch.nn.GELU() default.
    out = 0.5 * acc * (1.0 + jax.lax.erf(acc * 0.7071067811865476))
    o_ref[...] = out[None].astype(o_ref.dtype)


def _expand_weights(weight, W, padding):
    """OIHW conv weight -> banded matrices M[cin, kh] of shape (W, W*Cout).

    M[cin, kh, w', w*Cout + c] = weight[c, cin, kh, w' - w + padding]
    (zero when the kw index is out of range), so a single matmul over w'
    realizes all kw taps *and* the horizontal zero padding.
    """
    Cout, Cin, KH, KW = weight.shape
    # S[kw, w', w] = 1  iff  w == w' - kw + padding
    S = jnp.stack([jnp.eye(W, W, k=padding - kw, dtype=weight.dtype)
                   for kw in range(KW)])
    M = jnp.einsum('oiak,kvw->iavwo', weight, S)     # (Cin, KH, W, W, Cout)
    return M.reshape(Cin, KH, W, W * Cout)


def convolution_concat_block(x1, x2, weight, bias, *, stride=1, padding=1):
    """x1: (N,C1,H,W), x2: (N,C2,H,W) NCHW.  weight: (Cout,Cin,KH,KW) OIHW.

    Returns NCHW (N, Cout, H, W), matching the torch module forward.
    """
    N, C1, H, W = x1.shape
    N2, C2, H2, W2 = x2.shape
    Cout, Cin_w, KH, KW = weight.shape
    assert stride == 1, "only stride=1 implemented (module default)"
    assert 2 * padding == KH - 1 and KH == KW, "only 'same' conv implemented"
    assert Cin_w == C1 + C2 and N2 == N and H2 == H and W2 == W
    WCout = W * Cout

    m = _expand_weights(weight, W, padding)          # (Cin, KH, W, W*Cout)
    b = jnp.tile(bias, W).reshape(1, WCout)          # b[w*Cout + c] = bias[c]

    kern = functools.partial(conv_gelu_kernel, H=H, WCout=WCout,
                             C1=C1, C2=C2, KH=KH, padding=padding)

    out = pl.pallas_call(
        kern,
        out_shape=jax.ShapeDtypeStruct((N, H, WCout), x1.dtype),
        grid=(N,),
        in_specs=[
            pl.BlockSpec((1, C1, H, W), lambda n: (n, 0, 0, 0)),
            pl.BlockSpec((1, C2, H, W), lambda n: (n, 0, 0, 0)),
            pl.BlockSpec((C1 + C2, KH, W, WCout), lambda n: (0, 0, 0, 0)),
            pl.BlockSpec((1, WCout), lambda n: (0, 0)),
        ],
        out_specs=pl.BlockSpec((1, H, WCout), lambda n: (n, 0, 0)),
        compiler_params=pltpu.CompilerParams(
            dimension_semantics=("parallel",)),
    )(x1, x2, m, b)

    # (N, H, W*Cout) -> (N, H, W, Cout) -> NCHW.  The reshape is a trailing-dim
    # split (no data movement); the transpose is the only activation glue left.
    return out.reshape(N, H, W, Cout).transpose(0, 3, 1, 2)


def _reference(x1, x2, weight, bias, *, padding=1):
    """Pure-JAX reference of the torch forward (for correctness check)."""
    x = jnp.concatenate([x1, x2], axis=1)
    y = jax.lax.conv_general_dilated(
        x, weight, window_strides=(1, 1),
        padding=((padding, padding), (padding, padding)),
        dimension_numbers=("NCHW", "OIHW", "NCHW"))
    y = y + bias[None, :, None, None]
    return 0.5 * y * (1.0 + jax.lax.erf(y / jnp.sqrt(2.0).astype(y.dtype)))


if __name__ == "__main__":
    key = jax.random.PRNGKey(0)
    k1, k2, k3, k4 = jax.random.split(key, 4)

    # Small shapes consistent with the module: in_channels = C1 + C2 = 4.
    N, C1, C2, H, W = 2, 2, 2, 16, 16
    in_channels, out_channels, ksize = C1 + C2, 8, 3

    x1 = jax.random.normal(k1, (N, C1, H, W), dtype=jnp.float32)
    x2 = jax.random.normal(k2, (N, C2, H, W), dtype=jnp.float32)
    weight = 0.1 * jax.random.normal(
        k3, (out_channels, in_channels, ksize, ksize), dtype=jnp.float32)
    bias = 0.1 * jax.random.normal(k4, (out_channels,), dtype=jnp.float32)

    out = convolution_concat_block(x1, x2, weight, bias)
    out = jax.block_until_ready(out)

    ref = _reference(x1, x2, weight, bias)
    assert out.shape == (N, out_channels, H, W)
    assert jnp.allclose(out, ref, atol=1e-5, rtol=1e-5)

    print("KERNEL_OK")
</pallas_src>

<mosaic_0001>
module attributes {stable_mosaic.version = 11 : i64} {
  func.func @conv_gelu_kernel(%arg0: i32, %arg1: memref<1x2x16x16xf32, #tpu.memory_space<vmem>>, %arg2: memref<1x2x16x16xf32, #tpu.memory_space<vmem>>, %arg3: memref<4x3x16x128xf32, #tpu.memory_space<vmem>>, %arg4: memref<1x128xf32, #tpu.memory_space<vmem>>, %arg5: memref<1x16x128xf32, #tpu.memory_space<vmem>>) attributes {dimension_semantics = [#tpu.dimension_semantics<parallel>], iteration_bounds = array<i64: 2>, scalar_prefetch = 0 : i64, scratch_operands = 0 : i64, tpu.core_type = #tpu.core_type<tc>, window_params = [{transform_indices = @transform_0, window_bounds = array<i64: 1, 2, 16, 16>}, {transform_indices = @transform_1, window_bounds = array<i64: 1, 2, 16, 16>}, {pipeline_mode = #tpu.pipeline_mode<synchronous>, transform_indices = @transform_2, window_bounds = array<i64: 4, 3, 16, 128>}, {pipeline_mode = #tpu.pipeline_mode<synchronous>, transform_indices = @transform_3, window_bounds = array<i64: 1, 128>}, {transform_indices = @transform_4, window_bounds = array<i64: 1, 16, 128>}]} {
    %cst = arith.constant 0.000000e+00 : f32
    %0 = vector.broadcast %cst : f32 to vector<16x128xf32>
    %cst_0 = arith.constant 0.000000e+00 : f32
    %1 = vector.broadcast %cst_0 : f32 to vector<16x128xf32>
    %cst_1 = arith.constant 0.000000e+00 : f32
    %2 = vector.broadcast %cst_1 : f32 to vector<16x128xf32>
    %c0 = arith.constant 0 : index
    %c0_2 = arith.constant 0 : index
    %c0_3 = arith.constant 0 : index
    %c0_4 = arith.constant 0 : index
    %3 = vector.load %arg1[%c0, %c0_2, %c0_3, %c0_4] : memref<1x2x16x16xf32, #tpu.memory_space<vmem>>, vector<1x1x16x16xf32>
    %4 = vector.shape_cast %3 : vector<1x1x16x16xf32> to vector<16x16xf32>
    %c0_5 = arith.constant 0 : index
    %c0_6 = arith.constant 0 : index
    %c0_7 = arith.constant 0 : index
    %c0_8 = arith.constant 0 : index
    %5 = vector.load %arg3[%c0_5, %c0_6, %c0_7, %c0_8] : memref<4x3x16x128xf32, #tpu.memory_space<vmem>>, vector<1x1x16x128xf32>
    %6 = vector.shape_cast %5 : vector<1x1x16x128xf32> to vector<16x128xf32>
    %cst_9 = arith.constant dense<0.000000e+00> : vector<16x128xf32>
    %7 = tpu.matmul %4, %6, %cst_9 {dimension_numbers = #tpu.dot_dimension_numbers<[1], [0], [0], [1], [0, 0, 1, 1], [], []>} : vector<16x16xf32>, vector<16x128xf32>, vector<16x128xf32> -> vector<16x128xf32>
    %8 = arith.addf %0, %7 : vector<16x128xf32>
    %c0_10 = arith.constant 0 : index
    %c1 = arith.constant 1 : index
    %c0_11 = arith.constant 0 : index
    %c0_12 = arith.constant 0 : index
    %9 = vector.load %arg3[%c0_10, %c1, %c0_11, %c0_12] : memref<4x3x16x128xf32, #tpu.memory_space<vmem>>, vector<1x1x16x128xf32>
    %10 = vector.shape_cast %9 : vector<1x1x16x128xf32> to vector<16x128xf32>
    %cst_13 = arith.constant dense<0.000000e+00> : vector<16x128xf32>
    %11 = tpu.matmul %4, %10, %cst_13 {dimension_numbers = #tpu.dot_dimension_numbers<[1], [0], [0], [1], [0, 0, 1, 1], [], []>} : vector<16x16xf32>, vector<16x128xf32>, vector<16x128xf32> -> vector<16x128xf32>
    %12 = arith.addf %1, %11 : vector<16x128xf32>
    %c0_14 = arith.constant 0 : index
    %c2 = arith.constant 2 : index
    %c0_15 = arith.constant 0 : index
    %c0_16 = arith.constant 0 : index
    %13 = vector.load %arg3[%c0_14, %c2, %c0_15, %c0_16] : memref<4x3x16x128xf32, #tpu.memory_space<vmem>>, vector<1x1x16x128xf32>
    %14 = vector.shape_cast %13 : vector<1x1x16x128xf32> to vector<16x128xf32>
    %cst_17 = arith.constant dense<0.000000e+00> : vector<16x128xf32>
    %15 = tpu.matmul %4, %14, %cst_17 {dimension_numbers = #tpu.dot_dimension_numbers<[1], [0], [0], [1], [0, 0, 1, 1], [], []>} : vector<16x16xf32>, vector<16x128xf32>, vector<16x128xf32> -> vector<16x128xf32>
    %16 = arith.addf %2, %15 : vector<16x128xf32>
    %c0_18 = arith.constant 0 : index
    %c1_19 = arith.constant 1 : index
    %c0_20 = arith.constant 0 : index
    %c0_21 = arith.constant 0 : index
    %17 = vector.load %arg1[%c0_18, %c1_19, %c0_20, %c0_21] : memref<1x2x16x16xf32, #tpu.memory_space<vmem>>, vector<1x1x16x16xf32>
    %18 = vector.shape_cast %17 : vector<1x1x16x16xf32> to vector<16x16xf32>
    %c1_22 = arith.constant 1 : index
    %c0_23 = arith.constant 0 : index
    %c0_24 = arith.constant 0 : index
    %c0_25 = arith.constant 0 : index
    %19 = vector.load %arg3[%c1_22, %c0_23, %c0_24, %c0_25] : memref<4x3x16x128xf32, #tpu.memory_space<vmem>>, vector<1x1x16x128xf32>
    %20 = vector.shape_cast %19 : vector<1x1x16x128xf32> to vector<16x128xf32>
    %cst_26 = arith.constant dense<0.000000e+00> : vector<16x128xf32>
    %21 = tpu.matmul %18, %20, %cst_26 {dimension_numbers = #tpu.dot_dimension_numbers<[1], [0], [0], [1], [0, 0, 1, 1], [], []>} : vector<16x16xf32>, vector<16x128xf32>, vector<16x128xf32> -> vector<16x128xf32>
    %22 = arith.addf %8, %21 : vector<16x128xf32>
    %c1_27 = arith.constant 1 : index
    %c1_28 = arith.constant 1 : index
    %c0_29 = arith.constant 0 : index
    %c0_30 = arith.constant 0 : index
    %23 = vector.load %arg3[%c1_27, %c1_28, %c0_29, %c0_30] : memref<4x3x16x128xf32, #tpu.memory_space<vmem>>, vector<1x1x16x128xf32>
    %24 = vector.shape_cast %23 : vector<1x1x16x128xf32> to vector<16x128xf32>
    %cst_31 = arith.constant dense<0.000000e+00> : vector<16x128xf32>
    %25 = tpu.matmul %18, %24, %cst_31 {dimension_numbers = #tpu.dot_dimension_numbers<[1], [0], [0], [1], [0, 0, 1, 1], [], []>} : vector<16x16xf32>, vector<16x128xf32>, vector<16x128xf32> -> vector<16x128xf32>
    %26 = arith.addf %12, %25 : vector<16x128xf32>
    %c1_32 = arith.constant 1 : index
    %c2_33 = arith.constant 2 : index
    %c0_34 = arith.constant 0 : index
    %c0_35 = arith.constant 0 : index
    %27 = vector.load %arg3[%c1_32, %c2_33, %c0_34, %c0_35] : memref<4x3x16x128xf32, #tpu.memory_space<vmem>>, vector<1x1x16x128xf32>
    %28 = vector.shape_cast %27 : vector<1x1x16x128xf32> to vector<16x128xf32>
    %cst_36 = arith.constant dense<0.000000e+00> : vector<16x128xf32>
    %29 = tpu.matmul %18, %28, %cst_36 {dimension_numbers = #tpu.dot_dimension_numbers<[1], [0], [0], [1], [0, 0, 1, 1], [], []>} : vector<16x16xf32>, vector<16x128xf32>, vector<16x128xf32> -> vector<16x128xf32>
    %30 = arith.addf %16, %29 : vector<16x128xf32>
    %c0_37 = arith.constant 0 : index
    %c0_38 = arith.constant 0 : index
    %c0_39 = arith.constant 0 : index
    %c0_40 = arith.constant 0 : index
    %31 = vector.load %arg2[%c0_37, %c0_38, %c0_39, %c0_40] : memref<1x2x16x16xf32, #tpu.memory_space<vmem>>, vector<1x1x16x16xf32>
    %32 = vector.shape_cast %31 : vector<1x1x16x16xf32> to vector<16x16xf32>
    %c2_41 = arith.constant 2 : index
    %c0_42 = arith.constant 0 : index
    %c0_43 = arith.constant 0 : index
    %c0_44 = arith.constant 0 : index
    %33 = vector.load %arg3[%c2_41, %c0_42, %c0_43, %c0_44] : memref<4x3x16x128xf32, #tpu.memory_space<vmem>>, vector<1x1x16x128xf32>
    %34 = vector.shape_cast %33 : vector<1x1x16x128xf32> to vector<16x128xf32>
    %cst_45 = arith.constant dense<0.000000e+00> : vector<16x128xf32>
    %35 = tpu.matmul %32, %34, %cst_45 {dimension_numbers = #tpu.dot_dimension_numbers<[1], [0], [0], [1], [0, 0, 1, 1], [], []>} : vector<16x16xf32>, vector<16x128xf32>, vector<16x128xf32> -> vector<16x128xf32>
    %36 = arith.addf %22, %35 : vector<16x128xf32>
    %c2_46 = arith.constant 2 : index
    %c1_47 = arith.constant 1 : index
    %c0_48 = arith.constant 0 : index
    %c0_49 = arith.constant 0 : index
    %37 = vector.load %arg3[%c2_46, %c1_47, %c0_48, %c0_49] : memref<4x3x16x128xf32, #tpu.memory_space<vmem>>, vector<1x1x16x128xf32>
    %38 = vector.shape_cast %37 : vector<1x1x16x128xf32> to vector<16x128xf32>
    %cst_50 = arith.constant dense<0.000000e+00> : vector<16x128xf32>
    %39 = tpu.matmul %32, %38, %cst_50 {dimension_numbers = #tpu.dot_dimension_numbers<[1], [0], [0], [1], [0, 0, 1, 1], [], []>} : vector<16x16xf32>, vector<16x128xf32>, vector<16x128xf32> -> vector<16x128xf32>
    %40 = arith.addf %26, %39 : vector<16x128xf32>
    %c2_51 = arith.constant 2 : index
    %c2_52 = arith.constant 2 : index
    %c0_53 = arith.constant 0 : index
    %c0_54 = arith.constant 0 : index
    %41 = vector.load %arg3[%c2_51, %c2_52, %c0_53, %c0_54] : memref<4x3x16x128xf32, #tpu.memory_space<vmem>>, vector<1x1x16x128xf32>
    %42 = vector.shape_cast %41 : vector<1x1x16x128xf32> to vector<16x128xf32>
    %cst_55 = arith.constant dense<0.000000e+00> : vector<16x128xf32>
    %43 = tpu.matmul %32, %42, %cst_55 {dimension_numbers = #tpu.dot_dimension_numbers<[1], [0], [0], [1], [0, 0, 1, 1], [], []>} : vector<16x16xf32>, vector<16x128xf32>, vector<16x128xf32> -> vector<16x128xf32>
    %44 = arith.addf %30, %43 : vector<16x128xf32>
    %c0_56 = arith.constant 0 : index
    %c1_57 = arith.constant 1 : index
    %c0_58 = arith.constant 0 : index
    %c0_59 = arith.constant 0 : index
    %45 = vector.load %arg2[%c0_56, %c1_57, %c0_58, %c0_59] : memref<1x2x16x16xf32, #tpu.memory_space<vmem>>, vector<1x1x16x16xf32>
    %46 = vector.shape_cast %45 : vector<1x1x16x16xf32> to vector<16x16xf32>
    %c3 = arith.constant 3 : index
    %c0_60 = arith.constant 0 : index
    %c0_61 = arith.constant 0 : index
    %c0_62 = arith.constant 0 : index
    %47 = vector.load %arg3[%c3, %c0_60, %c0_61, %c0_62] : memref<4x3x16x128xf32, #tpu.memory_space<vmem>>, vector<1x1x16x128xf32>
    %48 = vector.shape_cast %47 : vector<1x1x16x128xf32> to vector<16x128xf32>
    %cst_63 = arith.constant dense<0.000000e+00> : vector<16x128xf32>
    %49 = tpu.matmul %46, %48, %cst_63 {dimension_numbers = #tpu.dot_dimension_numbers<[1], [0], [0], [1], [0, 0, 1, 1], [], []>} : vector<16x16xf32>, vector<16x128xf32>, vector<16x128xf32> -> vector<16x128xf32>
    %50 = arith.addf %36, %49 : vector<16x128xf32>
    %c3_64 = arith.constant 3 : index
    %c1_65 = arith.constant 1 : index
    %c0_66 = arith.constant 0 : index
    %c0_67 = arith.constant 0 : index
    %51 = vector.load %arg3[%c3_64, %c1_65, %c0_66, %c0_67] : memref<4x3x16x128xf32, #tpu.memory_space<vmem>>, vector<1x1x16x128xf32>
    %52 = vector.shape_cast %51 : vector<1x1x16x128xf32> to vector<16x128xf32>
    %cst_68 = arith.constant dense<0.000000e+00> : vector<16x128xf32>
    %53 = tpu.matmul %46, %52, %cst_68 {dimension_numbers = #tpu.dot_dimension_numbers<[1], [0], [0], [1], [0, 0, 1, 1], [], []>} : vector<16x16xf32>, vector<16x128xf32>, vector<16x128xf32> -> vector<16x128xf32>
    %54 = arith.addf %40, %53 : vector<16x128xf32>
    %c3_69 = arith.constant 3 : index
    %c2_70 = arith.constant 2 : index
    %c0_71 = arith.constant 0 : index
    %c0_72 = arith.constant 0 : index
    %55 = vector.load %arg3[%c3_69, %c2_70, %c0_71, %c0_72] : memref<4x3x16x128xf32, #tpu.memory_space<vmem>>, vector<1x1x16x128xf32>
    %56 = vector.shape_cast %55 : vector<1x1x16x128xf32> to vector<16x128xf32>
    %cst_73 = arith.constant dense<0.000000e+00> : vector<16x128xf32>
    %57 = tpu.matmul %46, %56, %cst_73 {dimension_numbers = #tpu.dot_dimension_numbers<[1], [0], [0], [1], [0, 0, 1, 1], [], []>} : vector<16x16xf32>, vector<16x128xf32>, vector<16x128xf32> -> vector<16x128xf32>
    %58 = arith.addf %44, %57 : vector<16x128xf32>
    %c0_74 = arith.constant 0 : index
    %c0_75 = arith.constant 0 : index
    %59 = vector.load %arg4[%c0_74, %c0_75] : memref<1x128xf32, #tpu.memory_space<vmem>>, vector<1x128xf32>
    %60 = vector.broadcast %59 : vector<1x128xf32> to vector<16x128xf32>
    %61 = arith.addf %60, %54 : vector<16x128xf32>
    %cst_76 = arith.constant 0.000000e+00 : f32
    %62 = vector.broadcast %cst_76 : f32 to vector<1x128xf32>
    %63 = vector.extract_strided_slice %50 {offsets = [0, 0], sizes = [15, 128], strides = [1, 1]} : vector<16x128xf32> to vector<15x128xf32>
    %64 = tpu.concatenate %62, %63 in 0 : vector<1x128xf32>, vector<15x128xf32> -> vector<16x128xf32>
    %65 = arith.addf %61, %64 : vector<16x128xf32>
    %66 = vector.extract_strided_slice %58 {offsets = [1, 0], sizes = [15, 128], strides = [1, 1]} : vector<16x128xf32> to vector<15x128xf32>
    %cst_77 = arith.constant 0.000000e+00 : f32
    %67 = vector.broadcast %cst_77 : f32 to vector<1x128xf32>
    %68 = tpu.concatenate %66, %67 in 0 : vector<15x128xf32>, vector<1x128xf32> -> vector<16x128xf32>
    %69 = arith.addf %65, %68 : vector<16x128xf32>
    %cst_78 = arith.constant 5.000000e-01 : f32
    %70 = vector.broadcast %cst_78 : f32 to vector<16x128xf32>
    %71 = arith.mulf %70, %69 : vector<16x128xf32>
    %cst_79 = arith.constant 0.707106769 : f32
    %72 = vector.broadcast %cst_79 : f32 to vector<16x128xf32>
    %73 = arith.mulf %69, %72 : vector<16x128xf32>
    %74 = math.erf %73 : vector<16x128xf32>
    %cst_80 = arith.constant 1.000000e+00 : f32
    %75 = vector.broadcast %cst_80 : f32 to vector<16x128xf32>
    %76 = arith.addf %75, %74 : vector<16x128xf32>
    %77 = arith.mulf %71, %76 : vector<16x128xf32>
    %78 = vector.shape_cast %77 : vector<16x128xf32> to vector<1x16x128xf32>
    %c0_81 = arith.constant 0 : index
    %c0_82 = arith.constant 0 : index
    %c0_83 = arith.constant 0 : index
    %79 = vector.load %arg5[%c0_81, %c0_82, %c0_83] : memref<1x16x128xf32, #tpu.memory_space<vmem>>, vector<1x16x128xf32>
    tpu.vector_store %arg5[%c0_81, %c0_82, %c0_83], %78 {strides = array<i32>} : memref<1x16x128xf32, #tpu.memory_space<vmem>>, vector<1x16x128xf32>,
    return
  }
  func.func @transform_0(%arg0: i32) -> (i32, i32, i32, i32) {
    %c0_i32 = arith.constant 0 : i32
    %c0_i32_0 = arith.constant 0 : i32
    %c0_i32_1 = arith.constant 0 : i32
    %c0_i32_2 = arith.constant 0 : i32
    return %arg0, %c0_i32, %c0_i32_0, %c0_i32_1 : i32, i32, i32, i32
  }
  func.func @transform_1(%arg0: i32) -> (i32, i32, i32, i32) {
    %c0_i32 = arith.constant 0 : i32
    %c0_i32_0 = arith.constant 0 : i32
    %c0_i32_1 = arith.constant 0 : i32
    %c0_i32_2 = arith.constant 0 : i32
    return %arg0, %c0_i32, %c0_i32_0, %c0_i32_1 : i32, i32, i32, i32
  }
  func.func @transform_2(%arg0: i32) -> (i32, i32, i32, i32) {
    %c0_i32 = arith.constant 0 : i32
    %c0_i32_0 = arith.constant 0 : i32
    %c0_i32_1 = arith.constant 0 : i32
    %c0_i32_2 = arith.constant 0 : i32
    %c0_i32_3 = arith.constant 0 : i32
    return %c0_i32, %c0_i32_0, %c0_i32_1, %c0_i32_2 : i32, i32, i32, i32
  }
  func.func @transform_3(%arg0: i32) -> (i32, i32) {
    %c0_i32 = arith.constant 0 : i32
    %c0_i32_0 = arith.constant 0 : i32
    %c0_i32_1 = arith.constant 0 : i32
    return %c0_i32, %c0_i32_0 : i32, i32
  }
  func.func @transform_4(%arg0: i32) -> (i32, i32, i32) {
    %c0_i32 = arith.constant 0 : i32
    %c0_i32_0 = arith.constant 0 : i32
    %c0_i32_1 = arith.constant 0 : i32
    return %arg0, %c0_i32, %c0_i32_0 : i32, i32, i32
  }
}

</mosaic_0001>

<bundles_post_ra>
// kernel: tpu_custom_call.1
= control target key start
LH: loop header
LB: loop body
LE: loop exit
PB: predicated region body
PF: predicated region fallthrough
CT: control target
= control target key end

     0   :  { %s2224_s0 = inlined_call_operand.hbm [shape: f32[2,2,16,16], index: 0, kind: input, shape index: {}]   ;;  %s2225_s1 = inlined_call_operand.hbm [shape: f32[2,2,16,16], index: 1, kind: input, shape index: {}]   ;;  %s2226_s2 = inlined_call_operand.hbm [shape: f32[4,3,16,128], index: 2, kind: input, shape index: {}]   ;;  %s2227_s3 = inlined_call_operand.vmem [shape: f32[1,128], index: 3, kind: input, shape index: {}]   ;;  %s2228_s4 = inlined_call_operand.hbm [shape: f32[2,16,128], index: 4, kind: output, shape index: {}]  }
   0x1   :  { %2236 = sst [smem:[#allocation14_spill]] %s2224_s0 }
   0x2   :  { %2237 = sst [smem:[#allocation15_spill]] %s2226_s2 }
   0x3   :  { %9 = vsyncpa [#allocation3], 0 }
   0x4   :  { %11 = vsyncpa [#allocation3 + $0x1], 0 }
   0x5   :  { %12 = vsyncpa [#allocation6], 0 }
   0x6   :  { %14 = vsyncpa [#allocation6 + $0x1], 0 }
   0x7   :  { %15 = vsyncpa [#allocation4], 0 }
   0x8   :  { %17 = vsyncpa [#allocation4 + $0x1], 0  ;;  %s1931_s15 = smov 0   ;;  %s1933_s16 = smov 0  }
   0x9   :  { %s1935_s17 = smov 0   ;;  %s1937_s18 = smov 0  }
   0xa LB: > { %s1952_s19 = sadd.s32 4294967295, %s1896_s18   ;;  %s1414_s20 = sadd.s32 4294967294, %s1896_s18   ;;  %s1896_s18 = sphi %s1937_s18, %s2260_s18   ;;  %s1892_s17 = sphi %s1935_s17, %s2259_s17   ;;  %s1888_s16 = sphi %s1933_s16, %s2258_s16   ;;  %s1884_s15 = sphi %s1931_s15, %s2257_s15  }
   0xb   : > { %p43_p0 = scmp.ne.s32.totalorder %s1888_s16, %s1884_s15  ;;  %p2229_p1 = scmp.eq.s32.totalorder %s1952_s19, 0 }
   0xc   : > { %p141_p3 = scmp.eq.s32.totalorder %s1414_s20, 1  ;;  %p1415_p5 = scmp.ge.s32.totalorder %s1896_s18, 1 }
   0xd   : > { %p1961_p4 = por %p2229_p1, %p43_p0  ;;  %p148_p7 = scmp.lt.s32.totalorder %s1896_s18, 3 }
   0xe   : > { %p1966_p6 = por %p141_p3, %p43_p0  ;;  %s1898_s24 = smov [#allocation7]  }
   0xf   : > { %s2238_s21 = scalar_select %p1961_p4, 1, 0 }
  0x10   : > { %s2239_s22 = scalar_select %p1966_p6, 1, 0 }
  0x11   : > { %p1971_p8 = pnand %p1415_p5, %p148_p7  ;;  %s160_s25 = sshll.u32 %s1898_s24, 4  ;;  %s1975_s25 = int_to_ptr.vmem [resolvable:$true] %s160_s25 }
  0x12   : > { %s1987_s27 = sadd.s32 1, %s1896_s18   ;;  %s30_s28 = sadd.s32 1, %s1892_s17 }
  0x13   : > { %s2240_s23 = scalar_select %p1971_p8, 1, 0 }
  0x14   : > { %p1674_p9 = pneg %p1971_p8  ;;  %s27_s29 = ssub.s32 %s1896_s18, %s1987_s27 }
  0x15   : > { %s2242_s2 = sld [smem:[#allocation15_spill]] }
  0x16   : > { %p1982_p11 = pnand %p1674_p9, %p2229_p1 }
  0x18   : > { %p1736_p13 = pneg %p1982_p11 }
  0x1b   : > { %s1734_s6 = scalar_lea.hbm %s2242_s2, 3072 }
  0x1c   : > { %p1735_p12 = scmp.ne.s32.totalorder %s2242_s2, %s1734_s6  ;;  %p1741_p5 = scmp.lt.u32.totalorder %s1734_s6, %s2242_s2 }
  0x1e   : > { %p1737_p0 = pnand %p1736_p13, %p1735_p12 }
  0x20   : > { %p1738_p3 = pneg %p1737_p0 }
  0x22   : > { %p1743_p7 = pnand %p1741_p5, %p1738_p3 }
  0x24   : > { %1746 = shalt.err (!%p1743_p7)
}
  0x25   : > { %s1747_s11 = scalar_lea.vmem %s1975_s25, 3072  ;;  %p1755_p2 = scmp.lt.s32.totalorder %s1975_s25, %s1975_s25 }
  0x26   : > { %p1748_p9 = scmp.ne.s32.totalorder %s1975_s25, %s1747_s11  ;;  %p1756_p6 = scmp.lt.s32.totalorder %s1747_s11, %s1747_s11 }
  0x28   : > { %p1750_p10 = pnand %p1748_p9, %p1736_p13  ;;  %p1757_p4 = por %p1756_p6, %p1755_p2 }
  0x2a   : > { %p1751_p1 = pneg %p1750_p10 }
  0x2c   : > { %p1758_p8 = pnand %p1757_p4, %p1751_p1 }
  0x2e   : > { %1761 = shalt.err (!%p1758_p8)
}
  0x2f   : > { %s2232_s12 = smov 128   ;;  %s2234_s13 = smov 8  }
  0x30   : > { %1677 = dma.hbm_to_vmem [thread:$0]  (!%p1982_p11), %s2242_s2, 3072, %s1975_s25, [#allocation6], %s2232_s12, %s2232_s12, %s2234_s13  }
  0x31   : > { %p28_p1 = scmp.eq.s32.totalorder %s27_s29, 0  ;;  %p37_p2 = scmp.ne.s32.totalorder %s1892_s17, %s1888_s16 }
  0x32   : > { %p38_p4 = scmp.eq.s32.totalorder %s1896_s18, 0  ;;  %p1690_p6 = scmp.lt.s32.totalorder %s1896_s18, 2 }
  0x33   : > { %s2021_s24 = scalar_select %p28_p1, %s1892_s17, %s30_s28  }
  0x34   : > { %p39_p8 = por %p38_p4, %p37_p2  ;;  %p2244_p10 = scmp.eq.s32.totalorder %s1952_s19, 1 }
  0x35   : > { %2243 = sst [smem:[#allocation13_spill]] %s2021_s24  ;;  %s177_s26 = sand.u32 1, %s1892_s17  }
  0x36   : > { %p2025_p12 = por %p2244_p10, %p37_p2  ;;  %s1463_s5 = sshll.u32 %s1896_s18, 9 }
  0x37   : > { %s2031_s6 = sshll.u32 %s177_s26, 5  ;;  %s2246_s0 = sld [smem:[#allocation14_spill]] }
  0x38   : > { %s181_s28 = scalar_lea.vmem [#allocation2], %s2031_s6  ;;  %p2039_p11 = pnand %p1690_p6, %p39_p8 }
  0x39   : > { %s188_s29 = sshll.u32 %s181_s28, 4  ;;  %s2048_s14 = scalar_lea.hbm %s2225_s1, %s1463_s5  ;;  %s2043_s29 = int_to_ptr.vmem [resolvable:$true] %s188_s29 }
  0x3a   : > { %s2050_s20 = scalar_lea.sflag [#allocation3], %s177_s26  ;;  %p1764_p0 = pneg %p2039_p11 }
  0x3d   : > { %s2036_s25 = scalar_lea.hbm %s2246_s0, %s1463_s5  ;;  %s1767_s12 = scalar_lea.hbm %s2246_s0, 1024 }
  0x3e   : > { %s1762_s7 = scalar_lea.hbm %s2036_s25, 512  ;;  %p1768_p7 = scmp.lt.u32.totalorder %s2036_s25, %s2246_s0 }
  0x3f   : > { %p1763_p13 = scmp.ne.s32.totalorder %s2036_s25, %s1762_s7  ;;  %p1769_p9 = scmp.lt.u32.totalorder %s1767_s12, %s1762_s7 }
  0x40   : > { %p1771_p2 = scmp.lt.u32.totalorder %s1762_s7, %s2036_s25 }
  0x41   : > { %p1765_p3 = pnand %p1764_p0, %p1763_p13  ;;  %p1770_p1 = por %p1769_p9, %p1768_p7 }
  0x43   : > { %p1766_p5 = pneg %p1765_p3  ;;  %p1772_p4 = por %p1771_p2, %p1770_p1 }
  0x45   : > { %p1773_p6 = pnand %p1772_p4, %p1766_p5 }
  0x47   : > { %1776 = shalt.err (!%p1773_p6)
}
  0x48   : > { %s1777_s26 = scalar_lea.vmem %s2043_s29, 512  ;;  %s1901_s5 = smov [#allocation2]  }
  0x49   : > { %p1778_p8 = scmp.ne.s32.totalorder %s2043_s29, %s1777_s26  ;;  %s1782_s10 = sshll.u32 %s1901_s5, 4  ;;  %s1783_s10 = int_to_ptr.vmem [resolvable:$false] %s1782_s10 }
  0x4a   : > { %s1784_s2 = scalar_lea.vmem %s1783_s10, 1024  ;;  %p1785_p3 = scmp.lt.s32.totalorder %s2043_s29, %s1783_s10 }
  0x4b   : > { %p1780_p10 = pnand %p1778_p8, %p1764_p0  ;;  %p1786_p7 = scmp.lt.s32.totalorder %s1784_s2, %s1777_s26 }
  0x4d   : > { %p1781_p13 = pneg %p1780_p10  ;;  %p1787_p9 = por %p1786_p7, %p1785_p3 }
  0x4f   : > { %p1788_p1 = pnand %p1787_p9, %p1781_p13 }
  0x51   : > { %1791 = shalt.err (!%p1788_p1)
}
  0x52   : > { %s2248_s12 = smov 8   ;;  %s2249_s13 = smov 128  }
  0x53   : > { %1681 = dma.hbm_to_vmem [thread:$0]  (!%p2039_p11), %s2036_s25, 512, %s2043_s29, %s2050_s20, %s2249_s13, %s2249_s13, %s2248_s12  }
  0x54   : > { %s202_s11 = scalar_lea.vmem [#allocation5], %s2031_s6  ;;  %s198_s8 = sand.u32 1, %s1896_s18  }
  0x55   : > { %s209_s7 = sshll.u32 %s202_s11, 4  ;;  %s2085_s28 = scalar_lea.sflag [#allocation6], %s198_s8  ;;  %s2083_s7 = int_to_ptr.vmem [resolvable:$true] %s209_s7 }
  0x56   : > { %s1792_s26 = scalar_lea.hbm %s2048_s14, 512  ;;  %s1797_s2 = scalar_lea.hbm %s2225_s1, 1024 }
  0x57   : > { %p1793_p5 = scmp.ne.s32.totalorder %s2048_s14, %s1792_s26  ;;  %p1798_p6 = scmp.lt.u32.totalorder %s2048_s14, %s2225_s1 }
  0x58   : > { %p1799_p8 = scmp.lt.u32.totalorder %s1797_s2, %s1792_s26  ;;  %p1801_p13 = scmp.lt.u32.totalorder %s1792_s26, %s2048_s14 }
  0x59   : > { %p1795_p2 = pnand %p1793_p5, %p1764_p0 }
  0x5a   : > { %p1800_p10 = por %p1799_p8, %p1798_p6 }
  0x5b   : > { %p1796_p4 = pneg %p1795_p2 }
  0x5c   : > { %p1802_p3 = por %p1801_p13, %p1800_p10 }
  0x5e   : > { %p1803_p7 = pnand %p1802_p3, %p1796_p4 }
  0x60   : > { %1806 = shalt.err (!%p1803_p7)
}
  0x61   : > { %s1807_s6 = scalar_lea.vmem %s2083_s7, 512  ;;  %s1902_s25 = smov [#allocation5]  }
  0x62   : > { %p1808_p9 = scmp.ne.s32.totalorder %s2083_s7, %s1807_s6  ;;  %s1812_s29 = sshll.u32 %s1902_s25, 4  ;;  %s1813_s29 = int_to_ptr.vmem [resolvable:$false] %s1812_s29 }
  0x63   : > { %s1814_s0 = scalar_lea.vmem %s1813_s29, 1024  ;;  %p1815_p2 = scmp.lt.s32.totalorder %s2083_s7, %s1813_s29 }
  0x64   : > { %p1810_p1 = pnand %p1808_p9, %p1764_p0  ;;  %p1816_p6 = scmp.lt.s32.totalorder %s1814_s0, %s1807_s6 }
  0x66   : > { %p1811_p5 = pneg %p1810_p1  ;;  %p1817_p8 = por %p1816_p6, %p1815_p2 }
  0x68   : > { %p1818_p10 = pnand %p1817_p8, %p1811_p5 }
  0x6a   : > { %1821 = shalt.err (!%p1818_p10)
}
  0x6b   : > { %1684 = dma.hbm_to_vmem [thread:$0]  (!%p2039_p11), %s2048_s14, 512, %s2083_s7, %s2085_s28, %s2249_s13, %s2249_s13, %s2248_s12  }
  0x6c   : > { %p2250_p0 = scmp.ne.s32.totalorder %s2240_s23, 0 }
  0x6d   : > { %s2117_s24 = sand.u32 (!%p2250_p0), 1, %s1888_s16   ;;  %p2251_p4 = scmp.ne.s32.totalorder (!%p2250_p0), %s2238_s21, 0 }
  0x6e   : > { %221 = sbr.rel (%p2250_p0) target bundleno = 419 (0x1a3), region = 36  ;;  %s1425_s20 = sshll.u32 (!%p2250_p0), %s2117_s24, 5 }
  0x6f   : > { %s224_s11 = scalar_lea.sflag (!%p2250_p0), [#allocation3], %s2117_s24  ;;  %s2121_s8 = scalar_lea.vmem (!%p2250_p0), [#allocation2], %s1425_s20 }
  0x75   : > { %1867 = dma.done.wait (%p2251_p4), %s224_s11, 512  }
  0x76   : > { %1869 = vsyncadd (%p2251_p4), %s224_s11, 4294966784  ;;  %s232_s9 = sand.u32 1, %s1952_s19   ;;  %s2128_s14 = scalar_lea.vmem [#allocation5], %s1425_s20 }
  0x77   : > { %s233_s23 = scalar_lea.sflag [#allocation6], %s232_s9 }
  0x78   : > { %1871 = dma.done.wait (%p2251_p4), %s233_s23, 512  }
  0x79   : > { %1873 = vsyncadd (%p2251_p4), %s233_s23, 4294966784  ;;  %p2252_p11 = scmp.eq.s32.totalorder %s1952_s19, 0 }
  0x7b   : > { %1875 = dma.done.wait (%p2252_p11), [#allocation6], 3072   ;;  %p2253_p13 = pmov %p2252_p11 }
  0x7c   : > { %vm286_vm0 = vcmask 130048   ;;  %v284_v0 = vld [vmem:[#allocation7 + $0x30] sm:$0xff]  ;;  %v285_v1 = vld [vmem:[#allocation7 + $0x38] sm:$0xff]  ;;  %v272_v7 = vld [vmem:[#allocation7] sm:$0xff]  ;;  %vm1263_vm1 = vcmask 1040384   ;;  %vm1274_vm2 = vcmask 1046528  }
  0x7d   : > { %1877 = vsyncadd (%p2253_p13), [#allocation6], 4294964224  ;;  %v603_v2 = vld [vmem:[#allocation7 + $0x50] sm:$0xff]  ;;  %v1598_v3 = vpack.c.bf16 %v285_v1, %v284_v0  ;;  %v604_v4 = vld [vmem:[#allocation7 + $0x58] sm:$0xff]  ;;  %s1428_s13 = sshll.u32 %s2117_s24, 4  ;;  %s1465_s7 = sshll.u32 %s1952_s19, 8 }
  0x7e   : > { %v1429_v5 = vld [vmem:[%s2121_s8 + $0x10] sm:$0xff]  ;;  %v1614_v6 = vpack.c.bf16 %v604_v4, %v603_v2  ;;  %v273_v8 = vld [vmem:[#allocation7 + $0x8] sm:$0xff]  ;;  %v278_v9 = vld [vmem:[#allocation7 + $0x20] sm:$0xff]  ;;  %s269_s28 = scalar_lea.vmem [#allocation8], %s1428_s13  ;;  %s2178_s2 = scalar_lea.hbm %s2228_s4, %s1465_s7 }
  0x7f   : > { %1518 = vmatprep.mubr.msk.f32.mxu1 %vm286_vm0, %v1429_v5  ;;  %1546 = vmatprep.mubr.msk.f32.mxu0 %vm286_vm0, %v1429_v5  ;;  %v1430_v10 = vld [vmem:[%s2121_s8 + $0x18] sm:$0xff]  ;;  %v1602_v11 = vpack.c.bf16 %v273_v8, %v272_v7  ;;  %v279_v12 = vld [vmem:[#allocation7 + $0x28] sm:$0xff]  ;;  %v450_v14 = vld [vmem:[#allocation7 + $0x40] sm:$0xff]  ;;  %s1309_s26 = sshll.u32 %s269_s28, 4  ;;  %s1296_s19 = scalar_lea.sflag [#allocation4], %s2117_s24  ;;  %s2180_s26 = int_to_ptr.vmem [resolvable:$true] %s1309_s26 }
  0x80   : > { %1599 = vmatprep.subr.bf16.mxu1 %v1598_v3  ;;  %1615 = vmatprep.subr.bf16.mxu0 %v1614_v6  ;;  %v1618_v13 = vpack.c.bf16 %v279_v12, %v278_v9  ;;  %v451_v15 = vld [vmem:[#allocation7 + $0x48] sm:$0xff]  ;;  %v758_v16 = vld [vmem:[#allocation7 + $0x60] sm:$0xff]  ;;  %v275_v21 = vld [vmem:[#allocation7 + $0x10] sm:$0xff]  ;;  %s1822_s6 = scalar_lea.vmem %s2180_s26, 256  ;;  %s1903_s25 = smov [#allocation8]  }
  0x81   : > { %1601 = vmatpush3.bf16.msra.mxu1 %v1598_v3  ;;  %1617 = vmatpush3.bf16.msra.mxu0 %v1614_v6  ;;  %v759_v17 = vld [vmem:[#allocation7 + $0x68] sm:$0xff]  ;;  %v270_v18 = vld [vmem:[%s2121_s8] sm:$0xff]  ;;  %v1606_v19 = vpack.c.bf16 %v451_v15, %v450_v14  ;;  %v276_v22 = vld [vmem:[#allocation7 + $0x18] sm:$0xff]  ;;  %p1823_p3 = scmp.ne.s32.totalorder %s2180_s26, %s1822_s6  ;;  %s1826_s29 = sshll.u32 %s1903_s25, 4  ;;  %s1827_s29 = int_to_ptr.vmem [resolvable:$false] %s1826_s29 }
  0x82   : > { %1603 = vmatprep.subr.bf16.mxu1 %v1602_v11  ;;  %1619 = vmatprep.subr.bf16.mxu0 %v1618_v13  ;;  %v1622_v20 = vpack.c.bf16 %v759_v17, %v758_v16  ;;  %v271_v23 = vld [vmem:[%s2121_s8 + $0x8] sm:$0xff]  ;;  %v924_v24 = vld [vmem:[#allocation7 + $0x80] sm:$0xff]  ;;  %v1610_v26 = vpack.c.bf16 %v276_v22, %v275_v21  ;;  %v1007_v29 = vld [vmem:[#allocation7 + $0x90] sm:$0xff]  ;;  %s1828_s0 = scalar_lea.vmem %s1827_s29, 512  ;;  %p1829_p1 = scmp.lt.s32.totalorder %s2180_s26, %s1827_s29 }
  0x83   : > { %v925_v25 = vld [vmem:[#allocation7 + $0x88] sm:$0xff]  ;;  %v755_v27 = vld [vmem:[%s2128_s14] sm:$0xff]  ;;  %v1008_v30 = vld [vmem:[#allocation7 + $0x98] sm:$0xff]  ;;  %p1824_p7 = pnand %p1823_p3, %p2025_p12  ;;  %p1830_p5 = scmp.lt.s32.totalorder %s1828_s0, %s1822_s6 }
  0x84   : > { %1519 = vmatmul.mubr.msk.f32.vlgmr.msra.gmra.mrb[0].mxu1 %vm286_vm0, %v1430_v10  ;;  %1547 = vmatmul.mubr.msk.f32.vlgmr.msra.gmra.mrb[0].mxu0 %vm286_vm0, %v1430_v10  ;;  %v1630_v28 = vpack.c.bf16 %v925_v25, %v924_v24  ;;  %v844_v31 = vld [vmem:[#allocation7 + $0x70] sm:$0xff]  ;;  %v845_v32 = vld [vmem:[#allocation7 + $0x78] sm:$0xff]  ;;  %v756_v33 = vld [vmem:[%s2128_s14 + $0x8] sm:$0xff]  ;;  %v1634_v34 = vpack.c.bf16 %v1008_v30, %v1007_v29 }
  0x85   : > { %1605 = vmatpush3.bf16.msra.mxu1 %v1602_v11  ;;  %1621 = vmatpush3.bf16.msra.mxu0 %v1618_v13  ;;  %v1626_v35 = vpack.c.bf16 %v845_v32, %v844_v31  ;;  %v1173_v36 = vld [vmem:[#allocation7 + $0xb0] sm:$0xff]  ;;  %v1174_v37 = vld [vmem:[#allocation7 + $0xb8] sm:$0xff]  ;;  %v1093_v40 = vld [vmem:[#allocation7 + $0xa0] sm:$0xff]  ;;  %p1825_p9 = pneg %p1824_p7  ;;  %p1831_p2 = por %p1830_p5, %p1829_p1 }
  0x86   : > { %1525 = vmatprep.mubr.msk.f32.mxu1 %vm286_vm0, %v270_v18  ;;  %1553 = vmatprep.mubr.msk.f32.mxu0 %vm286_vm0, %v270_v18  ;;  %v1449_v38 = vld [vmem:[%s2128_s14 + $0x10] sm:$0xff]  ;;  %v1642_v39 = vpack.c.bf16 %v1174_v37, %v1173_v36  ;;  %v1094_v41 = vld [vmem:[#allocation7 + $0xa8] sm:$0xff]  ;;  %v1450_v42 = vld [vmem:[%s2128_s14 + $0x18] sm:$0xff] }
  0x87   : > { %1607 = vmatprep.subr.bf16.mxu1 %v1606_v19  ;;  %1623 = vmatprep.subr.bf16.mxu0 %v1622_v20  ;;  %v1638_v43 = vpack.c.bf16 %v1094_v41, %v1093_v40  ;;  %v1457_v58 = vld [vmem:[%s2227_s3] ss:$0 sm:$0xff]  ;;  %p1832_p6 = pnand %p1831_p2, %p1825_p9 }
  0x8c   : > { %1526 = vmatmul.mubr.msk.f32.vlgmr.msra.gmra.mrb[0].mxu1 %vm286_vm0, %v271_v23  ;;  %1554 = vmatmul.mubr.msk.f32.vlgmr.msra.gmra.mrb[0].mxu0 %vm286_vm0, %v271_v23 }
  0x8d   : > { %1609 = vmatpush3.bf16.msra.mxu1 %v1606_v19  ;;  %1625 = vmatpush3.bf16.msra.mxu0 %v1622_v20 }
  0x8e   : > { %1532 = vmatprep.mubr.msk.f32.mxu1 %vm286_vm0, %v1429_v5  ;;  %1560 = vmatprep.mubr.msk.f32.mxu0 %vm286_vm0, %v755_v27 }
  0x8f   : > { %1611 = vmatprep.subr.bf16.mxu1 %v1610_v26  ;;  %1631 = vmatprep.subr.bf16.mxu0 %v1630_v28 }
  0x90   : > { %1533 = vmatmul.mubr.msk.f32.vlgmr.msra.gmra.mrb[2].mxu1 %vm286_vm0, %v1430_v10  ;;  %1561 = vmatmul.mubr.msk.f32.vlgmr.msra.gmra.mrb[2].mxu0 %vm286_vm0, %v756_v33 }
  0x91   : > { %1613 = vmatpush3.bf16.msra.mxu1 %v1610_v26  ;;  %1633 = vmatpush3.bf16.msra.mxu0 %v1630_v28 }
  0x92   : > { %1574 = vmatprep.mubr.msk.f32.mxu0 %vm286_vm0, %v755_v27  ;;  %1635 = vmatprep.subr.bf16.mxu0 %v1634_v34 }
  0x93   : > { %1539 = vmatprep.mubr.msk.f32.mxu1 %vm286_vm0, %v270_v18  ;;  %1627 = vmatprep.subr.bf16.mxu1 %v1626_v35 }
  0x94   : > { %1575 = vmatmul.mubr.msk.f32.vlgmr.msra.gmra.mrb[0].mxu0 %vm286_vm0, %v756_v33 }
  0x95   : > { %1637 = vmatpush3.bf16.msra.mxu0 %v1634_v34  ;;  %1581 = vmatprep.mubr.msk.f32.mxu0 %vm286_vm0, %v1449_v38 }
  0x96   : > { %1643 = vmatprep.subr.bf16.mxu0 %v1642_v39 }
  0x98   : > { %1540 = vmatmul.mubr.msk.f32.vlgmr.msra.gmra.mrb[2].mxu1 %vm286_vm0, %v271_v23  ;;  %1582 = vmatmul.mubr.msk.f32.vlgmr.msra.gmra.mrb[2].mxu0 %vm286_vm0, %v1450_v42 }
  0x99   : > { %1629 = vmatpush3.bf16.msra.mxu1 %v1626_v35  ;;  %1645 = vmatpush3.bf16.msra.mxu0 %v1642_v39 }
  0x9a   : > { %1595 = vmatprep.mubr.msk.f32.mxu0 %vm286_vm0, %v1449_v38  ;;  %1567 = vmatprep.mubr.msk.f32.mxu1 %vm286_vm0, %v755_v27 }
  0x9b   : > { %1639 = vmatprep.subr.bf16.mxu1 %v1638_v43 }
  0x9c   : > { %1596 = vmatmul.mubr.msk.f32.vlgmr.msra.gmra.mrb[0].mxu0 %vm286_vm0, %v1450_v42 }
  0xa0   : > { %1568 = vmatmul.mubr.msk.f32.vlgmr.msra.gmra.mrb[2].mxu1 %vm286_vm0, %v756_v33 }
  0xa1   : > { %1641 = vmatpush3.bf16.msra.mxu1 %v1638_v43  ;;  %1588 = vmatprep.mubr.msk.f32.mxu1 %vm286_vm0, %v1449_v38 }
  0xa8   : > { %1589 = vmatmul.mubr.msk.f32.vlgmr.msra.gmra.mrb[2].mxu1 %vm286_vm0, %v1450_v42 }
 0x15f   : > { %v1527_v44 = vpop.f32.mrb[0].mxu1 }
 0x160   : > { %v440_v45 = vpop.f32.mrb[1].mxu1 }
 0x16b   : > { %v1583_v46 = vpop.f32.mrb[2].mxu0 }
 0x16c   : > { %v1646_v47 = vadd.f32 %v1583_v46, %v1527_v44  ;;  %v1081_v48 = vpop.f32.mrb[3].mxu0 }
 0x16d   : > { %v1647_v49 = vadd.f32 %v1081_v48, %v440_v45 }
 0x16e   : > { %v1265_v50 = vrot.slane %v1646_v47, 7 }
 0x16f   : > { %v1264_v51 = vrot.slane %v1647_v49, 7  ;;  %v1597_v52 = vpop.f32.mrb[0].mxu0 }
 0x170   : > { %v1276_v53 = vrot.slane %v1597_v52, 1  ;;  %v1241_v54 = vpop.f32.mrb[1].mxu0 }
 0x171   : > { %v1275_v55 = vrot.slane %v1241_v54, 1  ;;  %v1266_v56 = vsel %vm1263_vm1, %v1264_v51, %v1265_v50  ;;  %v1269_v63 = vsel %vm1263_vm1, 0.0, %v1264_v51 }
 0x172   : > { %v1280_v1 = vsel %vm1274_vm2, %v1276_v53, 0.0 }
 0x173   : > { %v1277_v57 = vsel %vm1274_vm2, %v1275_v55, %v1276_v53 }
 0x17b   : > { %v1590_v59 = vpop.f32.mrb[2].mxu1 }
 0x17c   : > { %v1260_v60 = vadd.f32 %v1590_v59, %v1457_v58  ;;  %v1161_v61 = vpop.f32.mrb[3].mxu1 }
 0x17d   : > { %v1259_v62 = vadd.f32 %v1457_v58, %v1161_v61 }
 0x17e   : > { %v1271_v0 = vadd.f32 %v1266_v56, %v1260_v60 }
 0x17f   : > { %v1270_v2 = vadd.f32 %v1269_v63, %v1259_v62 }
 0x180   : > { %v1282_v3 = vadd.f32 %v1280_v1, %v1271_v0 }
 0x181   : > { %v1281_v4 = vadd.f32 %v1277_v57, %v1270_v2 }
 0x182   : > { %v1286_v5 = vmul.f32 0.70710677, %v1282_v3  ;;  %v1284_v9 = vmul.f32 0.5, %v1282_v3 }
 0x183   : > { %v1285_v6 = vmul.f32 0.70710677, %v1281_v4  ;;  %v1283_v11 = vmul.f32 0.5, %v1281_v4 }
 0x184   : > { %1730 = verf.f32 %v1286_v5 }
 0x185   : > { %1732 = verf.f32 %v1285_v6 }
 0x18e   : > { %v1731_v7 = vpop.eup %1730 }
 0x18f   : > { %v1733_v8 = vpop.eup %1732  ;;  %v1290_v10 = vadd.f32 1.0, %v1731_v7 }
 0x190   : > { %v1289_v12 = vadd.f32 1.0, %v1733_v8 }
 0x191   : > { %v1292_v13 = vmul.f32 %v1290_v10, %v1284_v9 }
 0x192   : > { %v1291_v14 = vmul.f32 %v1289_v12, %v1283_v11 }
 0x193   : > { %1294 = vst [vmem:[%s269_s28 + $0x8] sm:$0xff] %v1292_v13 }
 0x194   : > { %1293 = vst [vmem:[%s269_s28] sm:$0xff] %v1291_v14 }
 0x195   : > { %1835 = shalt.err (!%p1832_p6)
}
 0x196   : > { %s1836_s20 = scalar_lea.hbm %s2178_s2, 256  ;;  %s1840_s9 = scalar_lea.hbm %s2228_s4, 512 }
 0x197   : > { %p1837_p8 = scmp.ne.s32.totalorder %s2178_s2, %s1836_s20  ;;  %p1841_p4 = scmp.lt.u32.totalorder %s2178_s2, %s2228_s4 }
 0x198   : > { %p1842_p11 = scmp.lt.u32.totalorder %s1840_s9, %s1836_s20  ;;  %p1844_p3 = scmp.lt.u32.totalorder %s1836_s20, %s2178_s2 }
 0x199   : > { %p1838_p10 = pnand %p1837_p8, %p2025_p12 }
 0x19a   : > { %p1843_p13 = por %p1842_p11, %p1841_p4 }
 0x19b   : > { %p1839_p0 = pneg %p1838_p10 }
 0x19c   : > { %p1845_p7 = por %p1844_p3, %p1843_p13 }
 0x19e   : > { %p1846_p9 = pnand %p1845_p7, %p1839_p0 }
 0x1a0   : > { %1849 = shalt.err (!%p1846_p9)
}
 0x1a1   : > { %s1904_s21 = smov 128   ;;  %s1905_s12 = smov 8  }
 0x1a2   : > { %1672 = dma.vmem_to_hbm [thread:$0]  (%p2025_p12), %s2180_s26, 256, %s2178_s2, %s1296_s19, %s1904_s21, %s1904_s21, %s1905_s12  }
 0x1a3 PF: > { %s1324_s13 = sand.u32 1, %s1884_s15   ;;  %p2254_p1 = scmp.ne.s32.totalorder %s2239_s22, 0 }
 0x1a4   : > { %p2255_p5 = scmp.ge.s32.totalorder %s1896_s18, 2  ;;  %s1325_s7 = scalar_lea.sflag [#allocation4], %s1324_s13 }
 0x1a6   : > { %p1686_p2 = pnand %p2255_p5, %p2254_p1 }
 0x1a8   : > { %1879 = dma.done.wait (!%p1686_p2), %s1325_s7, 256  }
 0x1a9   : > { %1881 = vsyncadd (!%p1686_p2), %s1325_s7, 4294967040  ;;  %s2256_s28 = sld [smem:[#allocation13_spill]]  ;;  %p20_p6 = scmp.ge.s32.totalorder %s1987_s27, 4  }
 0x1aa   : > { %s2257_s15 = smov %s1888_s16  ;;  %s2258_s16 = smov %s1892_s17 }
 0x1ab   : > { %s2260_s18 = smov %s1987_s27  ;;  %22 = sbr.rel (!%p20_p6) target bundleno = 10 (0xa), region = 111 }
 0x1af   : > { %s2259_s17 = smov %s2256_s28 }
 0x1b2   :  { %1330 = vsyncpa [#allocation3], 1 }
 0x1b3   :  { %1332 = vsyncpa [#allocation3 + $0x1], 1 }
 0x1b4   :  { %1333 = vsyncpa [#allocation6], 1 }
 0x1b5   :  { %1335 = vsyncpa [#allocation6 + $0x1], 1 }
 0x1b6   :  { %1336 = vsyncpa [#allocation4], 1 }
 0x1b7   :  { %1338 = vsyncpa [#allocation4 + $0x1], 1 }

</bundles_post_ra>
